<compile_context>
chip_gen: v7x
topology: tpu7x:2x2x1
jax: 0.10.0
libtpu: 0.0.40
codegen_flags: <defaults>
</compile_context>

<pallas_src>
import math
import functools

import jax
import jax.numpy as jnp
from jax.experimental import pallas as pl
from jax.experimental.pallas import tpu as pltpu


LEAKY_SLOPE = 0.01  # PyTorch nn.LeakyReLU() default negative_slope


def _leaky_relu(x):
    return jnp.where(x > 0, x, LEAKY_SLOPE * x)


def gmm_kernel(x_ref, w1_ref, b1_ref, w2_ref, b2_ref, w3_ref, b3_ref, o_ref):
    # Transposed "channels x pixels" layout: pixels occupy the lane axis.
    #   x_ref : (C_in, tile)
    #   wN_ref: (C_outN, C_inN)   (conv weight squeezed, i.e. (out, in))
    #   bN_ref: (C_outN, 1)       (broadcast across the lane/pixel axis)
    #   o_ref : (C_out3, tile)
    # No explicit f32 upcast of x: the MXU accumulates in f32 via
    # preferred_element_type; elementwise work stays in f32.
    x = x_ref[...]

    h1 = jnp.dot(w1_ref[...], x, preferred_element_type=jnp.float32) + b1_ref[...]
    h1 = _leaky_relu(h1)

    h2 = jnp.dot(w2_ref[...], h1, preferred_element_type=jnp.float32) + b2_ref[...]
    h2 = _leaky_relu(h2)

    h3 = jnp.dot(w3_ref[...], h2, preferred_element_type=jnp.float32) + b3_ref[...]
    o_ref[...] = h3.astype(o_ref.dtype)


def _pick_tile(hw, tm):
    """Largest lane tile <= tm that keeps the last block dim (8,128)-friendly."""
    if hw <= 128:
        return hw                          # full-dim block (allowed even if <128)
    tm = max(128, (tm // 128) * 128)       # multiple of 128
    return min(tm, (hw // 128) * 128)      # ragged tail handled by cdiv grid


@functools.partial(jax.jit, static_argnames=("tm",))
def gmm_forward(x_nchw, params, tm=2048):
    """Runs GMM_Module.forward on an NCHW input using a fused Pallas kernel."""
    w1, b1, w2, b2, w3, b3 = params
    N, C, H, W = x_nchw.shape
    c1, c2, c3 = w1.shape[0], w2.shape[0], w3.shape[0]
    HW = H * W

    # NCHW -> (N, C, H*W): a free reshape, channels on sublanes, pixels on lanes.
    x3d = x_nchw.reshape(N, C, HW)

    tile = _pick_tile(HW, tm)
    grid_hw = pl.cdiv(HW, tile)            # ragged last tile is masked by Pallas

    out3d = pl.pallas_call(
        gmm_kernel,
        out_shape=jax.ShapeDtypeStruct((N, c3, HW), x_nchw.dtype),
        grid_spec=pl.GridSpec(
            grid=(N, grid_hw),
            in_specs=[
                pl.BlockSpec((None, C, tile), lambda n, j: (n, 0, j)),  # x tile
                pl.BlockSpec((c1, C), lambda n, j: (0, 0)),             # W1 (resident)
                pl.BlockSpec((c1, 1), lambda n, j: (0, 0)),             # b1
                pl.BlockSpec((c2, c1), lambda n, j: (0, 0)),            # W2 (resident)
                pl.BlockSpec((c2, 1), lambda n, j: (0, 0)),             # b2
                pl.BlockSpec((c3, c2), lambda n, j: (0, 0)),            # W3 (resident)
                pl.BlockSpec((c3, 1), lambda n, j: (0, 0)),             # b3
            ],
            out_specs=pl.BlockSpec((None, c3, tile), lambda n, j: (n, 0, j)),
        ),
        compiler_params=pltpu.CompilerParams(
            dimension_semantics=("parallel", "parallel")),  # both axes megacore-shardable
    )(x3d, w1, b1, w2, b2, w3, b3)

    # (N, c3, H*W) -> (N, c3, H, W): free reshape, no transpose.
    return out3d.reshape(N, c3, H, W)


def init_params(key, out_channel_M, k, dtype=jnp.float32):
    """Deterministic parameter init mirroring the PyTorch __init__.

    Conv2d(kernel_size=1) weight has shape (out, in, 1, 1); we store the
    squeezed (out, in) matrix so the kernel can compute y = W @ x directly
    in the channels-x-pixels orientation.
    xavier_normal_(gain): std = gain * sqrt(2 / (fan_in + fan_out)).
    """
    c_in = out_channel_M
    c1 = k * out_channel_M
    c2 = 2 * k * out_channel_M
    c3 = 3 * k * out_channel_M

    def xavier(key, fan_out, fan_in, gain):
        std = gain * math.sqrt(2.0 / (fan_in + fan_out))
        return (jax.random.normal(key, (fan_out, fan_in), dtype=jnp.float32) * std).astype(dtype)

    k1, k2, k3 = jax.random.split(key, 3)
    g1 = math.sqrt(2 * 1 * (k + 1) / (1 + 1))
    g2 = math.sqrt(2 * 1 * (k + 2 * k) / (k + k))
    g3 = math.sqrt(2 * 1 * (2 * k + 3 * k) / (2 * k + 2 * k))

    w1 = xavier(k1, c1, c_in, g1)
    w2 = xavier(k2, c2, c1, g2)
    w3 = xavier(k3, c3, c2, g3)
    b1 = jnp.full((c1, 1), 0.01, dtype=dtype)
    b2 = jnp.full((c2, 1), 0.01, dtype=dtype)
    b3 = jnp.full((c3, 1), 0.01, dtype=dtype)
    return (w1, b1, w2, b2, w3, b3)


def gmm_reference(x_nchw, params):
    """Plain-JAX reference of GMM_Module.forward (for correctness check)."""
    w1, b1, w2, b2, w3, b3 = params
    N, C, H, W = x_nchw.shape
    x = x_nchw.reshape(N, C, H * W)
    h = _leaky_relu(jnp.einsum("oc,ncp->nop", w1, x) + b1[None])
    h = _leaky_relu(jnp.einsum("oc,ncp->nop", w2, h) + b2[None])
    out = jnp.einsum("oc,ncp->nop", w3, h) + b3[None]
    return out.reshape(N, w3.shape[0], H, W)


if __name__ == "__main__":
    out_channel_M = 4
    k = 3
    N, H, W = 2, 16, 16  # 256 pixels per image; tile clamps to the full row

    key = jax.random.PRNGKey(0)
    kx, kp = jax.random.split(key)
    x = jax.random.normal(kx, (N, out_channel_M, H, W), dtype=jnp.float32)
    params = init_params(kp, out_channel_M, k)

    out = jax.block_until_ready(gmm_forward(x, params))

    ref = gmm_reference(x, params)
    assert out.shape == (N, 3 * k * out_channel_M, H, W), out.shape
    assert jnp.allclose(out, ref, atol=1e-4, rtol=1e-4), "mismatch vs reference"

    print("KERNEL_OK")
</pallas_src>

<mosaic_0001>
module attributes {stable_mosaic.version = 11 : i64} {
  func.func @gmm_kernel(%arg0: i32, %arg1: i32, %arg2: memref<1x4x256xf32, #tpu.memory_space<vmem>>, %arg3: memref<12x4xf32, #tpu.memory_space<vmem>>, %arg4: memref<12x1xf32, #tpu.memory_space<vmem>>, %arg5: memref<24x12xf32, #tpu.memory_space<vmem>>, %arg6: memref<24x1xf32, #tpu.memory_space<vmem>>, %arg7: memref<36x24xf32, #tpu.memory_space<vmem>>, %arg8: memref<36x1xf32, #tpu.memory_space<vmem>>, %arg9: memref<1x36x256xf32, #tpu.memory_space<vmem>>) attributes {dimension_semantics = [#tpu.dimension_semantics<parallel>, #tpu.dimension_semantics<parallel>], iteration_bounds = array<i64: 2, 1>, scalar_prefetch = 0 : i64, scratch_operands = 0 : i64, tpu.core_type = #tpu.core_type<tc>, window_params = [{transform_indices = @transform_0, window_bounds = array<i64: 1, 4, 256>}, {pipeline_mode = #tpu.pipeline_mode<synchronous>, transform_indices = @transform_1, window_bounds = array<i64: 12, 4>}, {pipeline_mode = #tpu.pipeline_mode<synchronous>, transform_indices = @transform_2, window_bounds = array<i64: 12, 1>}, {pipeline_mode = #tpu.pipeline_mode<synchronous>, transform_indices = @transform_3, window_bounds = array<i64: 24, 12>}, {pipeline_mode = #tpu.pipeline_mode<synchronous>, transform_indices = @transform_4, window_bounds = array<i64: 24, 1>}, {pipeline_mode = #tpu.pipeline_mode<synchronous>, transform_indices = @transform_5, window_bounds = array<i64: 36, 24>}, {pipeline_mode = #tpu.pipeline_mode<synchronous>, transform_indices = @transform_6, window_bounds = array<i64: 36, 1>}, {transform_indices = @transform_7, window_bounds = array<i64: 1, 36, 256>}]} {
    %c0 = arith.constant 0 : index
    %c0_0 = arith.constant 0 : index
    %c0_1 = arith.constant 0 : index
    %0 = vector.load %arg2[%c0, %c0_0, %c0_1] : memref<1x4x256xf32, #tpu.memory_space<vmem>>, vector<1x4x256xf32>
    %1 = vector.shape_cast %0 : vector<1x4x256xf32> to vector<4x256xf32>
    %c0_2 = arith.constant 0 : index
    %c0_3 = arith.constant 0 : index
    %2 = vector.load %arg3[%c0_2, %c0_3] : memref<12x4xf32, #tpu.memory_space<vmem>>, vector<12x4xf32>
    %cst = arith.constant dense<0.000000e+00> : vector<12x256xf32>
    %3 = tpu.matmul %2, %1, %cst {dimension_numbers = #tpu.dot_dimension_numbers<[1], [0], [0], [1], [0, 0, 1, 1], [], []>} : vector<12x4xf32>, vector<4x256xf32>, vector<12x256xf32> -> vector<12x256xf32>
    %c0_4 = arith.constant 0 : index
    %c0_5 = arith.constant 0 : index
    %4 = vector.load %arg4[%c0_4, %c0_5] : memref<12x1xf32, #tpu.memory_space<vmem>>, vector<12x1xf32>
    %5 = vector.broadcast %4 : vector<12x1xf32> to vector<12x256xf32>
    %6 = arith.addf %3, %5 : vector<12x256xf32>
    %cst_6 = arith.constant 0.000000e+00 : f32
    %7 = vector.broadcast %cst_6 : f32 to vector<12x256xf32>
    %8 = arith.cmpf ogt, %6, %7 : vector<12x256xf32>
    %cst_7 = arith.constant 0.00999999977 : f32
    %9 = vector.broadcast %cst_7 : f32 to vector<12x256xf32>
    %10 = arith.mulf %9, %6 : vector<12x256xf32>
    %11 = arith.select %8, %6, %10 : vector<12x256xi1>, vector<12x256xf32>
    %c0_8 = arith.constant 0 : index
    %c0_9 = arith.constant 0 : index
    %12 = vector.load %arg5[%c0_8, %c0_9] : memref<24x12xf32, #tpu.memory_space<vmem>>, vector<24x12xf32>
    %cst_10 = arith.constant dense<0.000000e+00> : vector<24x256xf32>
    %13 = tpu.matmul %12, %11, %cst_10 {dimension_numbers = #tpu.dot_dimension_numbers<[1], [0], [0], [1], [0, 0, 1, 1], [], []>} : vector<24x12xf32>, vector<12x256xf32>, vector<24x256xf32> -> vector<24x256xf32>
    %c0_11 = arith.constant 0 : index
    %c0_12 = arith.constant 0 : index
    %14 = vector.load %arg6[%c0_11, %c0_12] : memref<24x1xf32, #tpu.memory_space<vmem>>, vector<24x1xf32>
    %15 = vector.broadcast %14 : vector<24x1xf32> to vector<24x256xf32>
    %16 = arith.addf %13, %15 : vector<24x256xf32>
    %cst_13 = arith.constant 0.000000e+00 : f32
    %17 = vector.broadcast %cst_13 : f32 to vector<24x256xf32>
    %18 = arith.cmpf ogt, %16, %17 : vector<24x256xf32>
    %cst_14 = arith.constant 0.00999999977 : f32
    %19 = vector.broadcast %cst_14 : f32 to vector<24x256xf32>
    %20 = arith.mulf %19, %16 : vector<24x256xf32>
    %21 = arith.select %18, %16, %20 : vector<24x256xi1>, vector<24x256xf32>
    %c0_15 = arith.constant 0 : index
    %c0_16 = arith.constant 0 : index
    %22 = vector.load %arg7[%c0_15, %c0_16] : memref<36x24xf32, #tpu.memory_space<vmem>>, vector<36x24xf32>
    %cst_17 = arith.constant dense<0.000000e+00> : vector<36x256xf32>
    %23 = tpu.matmul %22, %21, %cst_17 {dimension_numbers = #tpu.dot_dimension_numbers<[1], [0], [0], [1], [0, 0, 1, 1], [], []>} : vector<36x24xf32>, vector<24x256xf32>, vector<36x256xf32> -> vector<36x256xf32>
    %c0_18 = arith.constant 0 : index
    %c0_19 = arith.constant 0 : index
    %24 = vector.load %arg8[%c0_18, %c0_19] : memref<36x1xf32, #tpu.memory_space<vmem>>, vector<36x1xf32>
    %25 = vector.broadcast %24 : vector<36x1xf32> to vector<36x256xf32>
    %26 = arith.addf %23, %25 : vector<36x256xf32>
    %c0_20 = arith.constant 0 : index
    %c0_21 = arith.constant 0 : index
    %c0_22 = arith.constant 0 : index
    %27 = vector.load %arg9[%c0_20, %c0_21, %c0_22] : memref<1x36x256xf32, #tpu.memory_space<vmem>>, vector<1x36x256xf32>
    %28 = vector.shape_cast %27 : vector<1x36x256xf32> to vector<36x256xf32>
    %29 = vector.shape_cast %26 : vector<36x256xf32> to vector<1x36x256xf32>
    tpu.vector_store %arg9[%c0_20, %c0_21, %c0_22], %29 {strides = array<i32>} : memref<1x36x256xf32, #tpu.memory_space<vmem>>, vector<1x36x256xf32>,
    return
  }
  func.func @transform_0(%arg0: i32, %arg1: i32) -> (i32, i32, i32) {
    %c0_i32 = arith.constant 0 : i32
    %c0_i32_0 = arith.constant 0 : i32
    return %arg0, %c0_i32, %arg1 : i32, i32, i32
  }
  func.func @transform_1(%arg0: i32, %arg1: i32) -> (i32, i32) {
    %c0_i32 = arith.constant 0 : i32
    %c0_i32_0 = arith.constant 0 : i32
    %c0_i32_1 = arith.constant 0 : i32
    return %c0_i32, %c0_i32_0 : i32, i32
  }
  func.func @transform_2(%arg0: i32, %arg1: i32) -> (i32, i32) {
    %c0_i32 = arith.constant 0 : i32
    %c0_i32_0 = arith.constant 0 : i32
    %c0_i32_1 = arith.constant 0 : i32
    return %c0_i32, %c0_i32_0 : i32, i32
  }
  func.func @transform_3(%arg0: i32, %arg1: i32) -> (i32, i32) {
    %c0_i32 = arith.constant 0 : i32
    %c0_i32_0 = arith.constant 0 : i32
    %c0_i32_1 = arith.constant 0 : i32
    return %c0_i32, %c0_i32_0 : i32, i32
  }
  func.func @transform_4(%arg0: i32, %arg1: i32) -> (i32, i32) {
    %c0_i32 = arith.constant 0 : i32
    %c0_i32_0 = arith.constant 0 : i32
    %c0_i32_1 = arith.constant 0 : i32
    return %c0_i32, %c0_i32_0 : i32, i32
  }
  func.func @transform_5(%arg0: i32, %arg1: i32) -> (i32, i32) {
    %c0_i32 = arith.constant 0 : i32
    %c0_i32_0 = arith.constant 0 : i32
    %c0_i32_1 = arith.constant 0 : i32
    return %c0_i32, %c0_i32_0 : i32, i32
  }
  func.func @transform_6(%arg0: i32, %arg1: i32) -> (i32, i32) {
    %c0_i32 = arith.constant 0 : i32
    %c0_i32_0 = arith.constant 0 : i32
    %c0_i32_1 = arith.constant 0 : i32
    return %c0_i32, %c0_i32_0 : i32, i32
  }
  func.func @transform_7(%arg0: i32, %arg1: i32) -> (i32, i32, i32) {
    %c0_i32 = arith.constant 0 : i32
    %c0_i32_0 = arith.constant 0 : i32
    return %arg0, %c0_i32, %arg1 : i32, i32, i32
  }
}

</mosaic_0001>

<bundles_post_ra>
// kernel: gmm_forward.1
= control target key start
LH: loop header
LB: loop body
LE: loop exit
PB: predicated region body
PF: predicated region fallthrough
CT: control target
= control target key end

     0   :  { %s950_s24 = smov 0   ;;  %s952_s25 = smov 0   ;;  %s1072_s0 = inlined_call_operand.vmem [shape: f32[2,4,256], index: 0, kind: input, shape index: {}]   ;;  %s1073_s1 = inlined_call_operand.vmem [shape: f32[12,4], index: 1, kind: input, shape index: {}]   ;;  %s1074_s2 = inlined_call_operand.vmem [shape: f32[12,1], index: 2, kind: input, shape index: {}]   ;;  %s1075_s3 = inlined_call_operand.vmem [shape: f32[24,12], index: 3, kind: input, shape index: {}]   ;;  %s1076_s4 = inlined_call_operand.vmem [shape: f32[24,1], index: 4, kind: input, shape index: {}]   ;;  %s1077_s5 = inlined_call_operand.vmem [shape: f32[36,24], index: 5, kind: input, shape index: {}]   ;;  %s1078_s6 = inlined_call_operand.vmem [shape: f32[36,1], index: 6, kind: input, shape index: {}]   ;;  %s1079_s7 = inlined_call_operand.vmem [shape: f32[2,36,256], index: 7, kind: output, shape index: {}]  }
   0x1   :  { %s954_s26 = smov 0  }
   0x2 LB: > { %s29_s27 = sadd.s32 1, %s901_s25  ;;  %p821_p0 = scmp.ge.s32.totalorder %s905_s26, 1  ;;  %s905_s26 = sphi %s954_s26, %s17_s26   ;;  %s901_s25 = sphi %s952_s25, %s1081_s25   ;;  %s897_s24 = sphi %s950_s24, %s1080_s24  }
   0x3   : > { %p31_p1 = scmp.ge.s32.totalorder %s29_s27, 2  ;;  %p258_p2 = scmp.lt.s32.totalorder %s905_s26, 3 }
   0x5   : > { %s1083_s27 = smov (%p31_p1, %s29_s27), 0  ;;  %p259_p3 = pnand %p821_p0, %p258_p2 }
   0x6   : > { %p299_p4 = scmp.lt.s32.totalorder (!%p259_p3), %s897_s24, 1  ;;  %v907_v0 = vmov (!%p259_p3), 0.0   ;;  %v908_v1 = vmov (!%p259_p3), 0   ;;  %v321_v2 = vld [vmem:[%s1074_s2] sm:$0xff] (!%p259_p3)  ;;  %v322_v3 = vld [vmem:[%s1074_s2 + $0x8] sm:$0xf] (!%p259_p3) }
   0x7   : > { %262 = sbr.rel (%p259_p3) target bundleno = 712 (0x2c8), region = 48  ;;  %411 = vmatprep.mubr.f32.mxu1 (!%p259_p3), %v907_v0  ;;  %880 = vset.pattern.permute.xlu0 (!%p259_p3), %v908_v1  ;;  %vm342_vm0 = vcmask (!%p259_p3), 1043456   ;;  %v441_v6 = vld [vmem:[%s1076_s4 + $0x10] sm:$0xff] (!%p259_p3)  ;;  %v319_v7 = vld [vmem:[%s1073_s1] sm:$0xff] (!%p259_p3)  ;;  %vm335_vm1 = vcmask (!%p259_p3), 31744   ;;  %v580_v8 = vld [vmem:[%s1078_s6 + $0x8] sm:$0xff] (!%p259_p3) }
   0x8   : > { %325 = vperm.xlu0 (!%p259_p3), %880, %v321_v2   ;;  %881 = vset.pattern.permute.xlu1 (!%p259_p3), %v908_v1  ;;  %v320_v9 = vld [vmem:[%s1073_s1 + $0x8] sm:$0xf] (!%p259_p3)  ;;  %v582_v10 = vld [vmem:[%s1078_s6 + $0x18] sm:$0xff] (!%p259_p3)  ;;  %v439_v11 = vld [vmem:[%s1076_s4] sm:$0xff] (!%p259_p3)  ;;  %vm909_vm6 = vmmov (!%p259_p3), 1   ;;  %vm457_vm8 = vcmask (!%p259_p3), 97280  }
   0x9   : > { %689 = vmatprep.mubr.f32.mxu0 (!%p259_p3), %v907_v0  ;;  %444 = vperm.xlu1 (!%p259_p3), %881, %v439_v11   ;;  %v440_v12 = vld [vmem:[%s1076_s4 + $0x8] sm:$0xff] (!%p259_p3)  ;;  %v579_v13 = vld [vmem:[%s1078_s6] sm:$0xff] (!%p259_p3)  ;;  %v581_v14 = vld [vmem:[%s1078_s6 + $0x10] sm:$0xff] (!%p259_p3)  ;;  %vm609_vm15 = vcmask (!%p259_p3), 195584  }
   0xa   : > { %v583_v15 = vld [vmem:[%s1078_s6 + $0x20] sm:$0xf] (!%p259_p3)  ;;  %vm843_vm7 = vmpackc.low (!%p259_p3), %vm342_vm0, %vm909_vm6  ;;  %v437_v37 = vld [vmem:[%s1075_s3 + $0x8] sm:$0xff] (!%p259_p3) }
   0xb   : > { %v436_v36 = vld [vmem:[%s1075_s3] sm:$0xff] (!%p259_p3)  ;;  %v438_v38 = vld [vmem:[%s1075_s3 + $0x10] sm:$0xff] (!%p259_p3) }
   0xc   : > { %330 = vperm.xlu0 (!%p259_p3), %880, %v322_v3  }
   0xd   : > { %449 = vperm.xlu1 (!%p259_p3), %881, %v440_v12  }
   0xe   : > { %s1085_s24 = smov (!%p299_p4, %s897_s24), 1 }
   0xf   : > { %s841_s9 = sshll.u32 %s1085_s24, 3  ;;  %s852_s11 = smul.u32 80, %s1085_s24 }
  0x10   : > { %s306_s12 = scalar_lea.vmem %s1072_s0, %s841_s9  ;;  %454 = vperm.xlu0 %880, %v441_v6   ;;  %v575_v6 = vld [vmem:[%s1077_s5 + $0x8] sm:$0xff] }
  0x11   : > { %v318_v4 = vld [vmem:[%s306_s12] sm:$0xff]  ;;  %586 = vperm.xlu1 %881, %v579_v13   ;;  %s1051_s14 = scalar_lea.vmem %s1079_s7, %s852_s11 }
  0x12   : > { %v334_v5 = vcombine.high %v318_v4, %v318_v4 }
  0x14   : > { %825 = vmatprep.subr.msk.mxu1 %vm342_vm0, %v334_v5  ;;  %591 = vperm.xlu0 %880, %v580_v8   ;;  %v577_v8 = vld [vmem:[%s1077_s5 + $0x18] sm:$0xff] }
  0x15   : > { %826 = vmatpush1.msk.msra.mxu1 %vm342_vm0, %v318_v4  ;;  %596 = vperm.xlu1 %881, %v581_v14   ;;  %v574_v4 = vld [vmem:[%s1077_s5] sm:$0xff] }
  0x16   : > { %827 = vmatmul.mubr.msk.f32.vlgmr.msra.gmra.mrb[0].mxu1 %vm335_vm1, %v319_v7  ;;  %v576_v7 = vld [vmem:[%s1077_s5 + $0x10] sm:$0xff] }
  0x17   : > { %417 = vmatprep.mubr.f32.mxu1 %v907_v0 }
  0x18   : > { %601 = vperm.xlu0 %880, %v582_v10  }
  0x19   : > { %606 = vperm.xlu1 %881, %v583_v15  }
  0x1a   : > { %828 = vmatmul.mubr.msk.f32.gmra.mrb[2].mxu1 %vm335_vm1, %v320_v9  ;;  %v578_v9 = vld [vmem:[%s1077_s5 + $0x20] sm:$0xf] }
  0x1b   : > { %537 = vmatprep.mubr.f32.mxu1 %v907_v0 }
  0x87   : > { %v326_v16 = vpop.permute.xlu0 %325 }
  0x88   : > { %v445_v39 = vpop.permute.xlu1 %444 }
  0x8b   : > { %v331_v21 = vpop.permute.xlu0 %330 }
  0x8c   : > { %v450_v44 = vpop.permute.xlu1 %449 }
  0x8f   : > { %v455_v52 = vpop.permute.xlu0 %454 }
  0x90   : > { %v587_v10 = vpop.permute.xlu1 %586 }
  0x93   : > { %v592_v14 = vpop.permute.xlu0 %591 }
  0xe9   : > { %v413_v17 = vpop.f32.mrb[0].mxu1 }
  0xea   : > { %v414_v18 = vadd.f32 %v413_v17, %v326_v16  ;;  %v415_v19 = vpop.f32.mrb[1].mxu1 }
  0xeb   : > { %v416_v20 = vadd.f32 %v415_v19, %v326_v16  ;;  %v597_v19 = vpop.permute.xlu1 %596 }
  0xec   : > { %v428_v23 = vmul.f32 0.01, %v414_v18  ;;  %vm424_vm2 = vcmp.gt.f32.partialorder %v414_v18, 0.0 }
  0xed   : > { %v419_v22 = vpop.f32.mrb[2].mxu1  ;;  %v429_v26 = vmul.f32 0.01, %v416_v20  ;;  %vm425_vm3 = vcmp.gt.f32.partialorder %v416_v20, 0.0 }
  0xee   : > { %v420_v24 = vadd.f32 %v419_v22, %v331_v21  ;;  %v421_v25 = vpop.f32.mrb[3].mxu1  ;;  %v432_v30 = vsel %vm424_vm2, %v414_v18, %v428_v23 }
  0xef   : > { %v422_v27 = vadd.f32 %v421_v25, %v331_v21  ;;  %v433_v32 = vsel %vm425_vm3, %v416_v20, %v429_v26 }
  0xf0   : > { %vm426_vm4 = vcmp.gt.f32.partialorder %v420_v24, 0.0  ;;  %v430_v28 = vmul.f32 0.01, %v420_v24 }
  0xf1   : > { %vm427_vm5 = vcmp.gt.f32.partialorder %v422_v27, 0.0  ;;  %v431_v29 = vmul.f32 0.01, %v422_v27 }
  0xf2   : > { %v434_v31 = vsel %vm426_vm4, %v420_v24, %v430_v28  ;;  %v602_v24 = vpop.permute.xlu0 %601 }
  0xf3   : > { %v845_v33 = vpack.c.bf16 %v434_v31, %v432_v30  ;;  %v435_v34 = vsel %vm427_vm5, %v422_v27, %v431_v29  ;;  %v607_v29 = vpop.permute.xlu1 %606 }
  0xf4   : > { %v842_v35 = vpack.c.bf16 %v435_v34, %v433_v32 }
  0xf6   : > { %844 = vmatprep.subr.msk.bf16.mxu1 %vm843_vm7, %v842_v35 }
  0xf7   : > { %847 = vmatpush1.bf16.msk.msra.mxu1 %vm843_vm7, %v845_v33 }
  0xfa   : > { %831 = vmatmul.mubr.msk.f32.vlgmr.msra.gmra.mrb[4].mxu1 %vm457_vm8, %v436_v36 }
  0xfb   : > { %543 = vmatprep.mubr.f32.mxu1 %v907_v0 }
  0xfe   : > { %832 = vmatmul.mubr.msk.f32.gmra.mrb[6].mxu1 %vm457_vm8, %v437_v37 }
  0xff   : > { %549 = vmatprep.mubr.f32.mxu1 %v907_v0 }
 0x102   : > { %833 = vmatmul.mubr.msk.f32.gmra.mrb[8].mxu1 %vm457_vm8, %v438_v38 }
 0x1cd   : > { %v539_v40 = vpop.f32.mrb[4].mxu1 }
 0x1ce   : > { %v540_v41 = vadd.f32 %v539_v40, %v445_v39  ;;  %v541_v42 = vpop.f32.mrb[5].mxu1 }
 0x1cf   : > { %v542_v43 = vadd.f32 %v541_v42, %v445_v39 }
 0x1d0   : > { %v562_v46 = vmul.f32 0.01, %v540_v41  ;;  %vm556_vm9 = vcmp.gt.f32.partialorder %v540_v41, 0.0 }
 0x1d1   : > { %v545_v45 = vpop.f32.mrb[6].mxu1  ;;  %v563_v49 = vmul.f32 0.01, %v542_v43  ;;  %vm557_vm10 = vcmp.gt.f32.partialorder %v542_v43, 0.0 }
 0x1d2   : > { %v546_v47 = vadd.f32 %v545_v45, %v450_v44  ;;  %v547_v48 = vpop.f32.mrb[7].mxu1  ;;  %v568_v57 = vsel %vm556_vm9, %v540_v41, %v562_v46 }
 0x1d3   : > { %v548_v50 = vadd.f32 %v547_v48, %v450_v44  ;;  %v569_v60 = vsel %vm557_vm10, %v542_v43, %v563_v49 }
 0x1d4   : > { %v564_v51 = vmul.f32 0.01, %v546_v47  ;;  %vm558_vm11 = vcmp.gt.f32.partialorder %v546_v47, 0.0 }
 0x1d5   : > { %v565_v53 = vmul.f32 0.01, %v548_v50  ;;  %v551_v54 = vpop.f32.mrb[8].mxu1  ;;  %vm559_vm12 = vcmp.gt.f32.partialorder %v548_v50, 0.0 }
 0x1d6   : > { %v552_v55 = vadd.f32 %v551_v54, %v455_v52  ;;  %v553_v56 = vpop.f32.mrb[9].mxu1  ;;  %v570_v58 = vsel %vm558_vm11, %v546_v47, %v564_v51 }
 0x1d7   : > { %v554_v59 = vadd.f32 %v553_v56, %v455_v52  ;;  %v571_v61 = vsel %vm559_vm12, %v548_v50, %v565_v53  ;;  %v850_v62 = vpack.c.bf16 %v570_v58, %v568_v57 }
 0x1d8   : > { %v848_v63 = vpack.c.bf16 %v571_v61, %v569_v60  ;;  %v566_v2 = vmul.f32 0.01, %v552_v55  ;;  %vm560_vm14 = vcmp.gt.f32.partialorder %v552_v55, 0.0 }
 0x1d9   : > { %v567_v1 = vmul.f32 0.01, %v554_v59  ;;  %vm561_vm13 = vcmp.gt.f32.partialorder %v554_v59, 0.0 }
 0x1da   : > { %849 = vmatprep.subr.bf16.mxu0 %v848_v63  ;;  %v572_v5 = vsel %vm560_vm14, %v552_v55, %v566_v2 }
 0x1db   : > { %851 = vmatpush1.bf16.msra.mxu0 %v850_v62  ;;  %v573_v3 = vsel %vm561_vm13, %v554_v59, %v567_v1 }
 0x1dc   : > { %629 = vmatprep.subr.mxu0 %v573_v3 }
 0x1df   : > { %630 = vmatpush1.msra.mxu0 %v572_v5 }
 0x1e0   : > { %834 = vmatmul.mubr.msk.f32.vlgmr.msra.gmra.mrb[0].mxu0 %vm609_vm15, %v574_v4 }
 0x1e1   : > { %695 = vmatprep.mubr.f32.mxu0 %v907_v0 }
 0x1e4   : > { %835 = vmatmul.mubr.msk.f32.gmra.mrb[2].mxu0 %vm609_vm15, %v575_v6 }
 0x1e5   : > { %701 = vmatprep.mubr.f32.mxu0 %v907_v0 }
 0x1e8   : > { %836 = vmatmul.mubr.msk.f32.gmra.mrb[4].mxu0 %vm609_vm15, %v576_v7 }
 0x1e9   : > { %707 = vmatprep.mubr.f32.mxu0 %v907_v0 }
 0x1ec   : > { %837 = vmatmul.mubr.msk.f32.gmra.mrb[6].mxu0 %vm609_vm15, %v577_v8 }
 0x1ed   : > { %713 = vmatprep.mubr.f32.mxu0 %v907_v0 }
 0x1f0   : > { %838 = vmatmul.mubr.msk.f32.gmra.mrb[8].mxu0 %vm609_vm15, %v578_v9 }
 0x2b3   : > { %v691_v11 = vpop.f32.mrb[0].mxu0 }
 0x2b4   : > { %v692_v12 = vadd.f32 %v691_v11, %v587_v10  ;;  %v693_v13 = vpop.f32.mrb[1].mxu0 }
 0x2b5   : > { %v694_v0 = vadd.f32 %v693_v13, %v587_v10 }
 0x2b6   : > { %720 = vst [vmem:[%s1051_s14] sm:$0xff] %v692_v12 }
 0x2b7   : > { %721 = vst [vmem:[%s1051_s14 + $0x8] sm:$0xff] %v694_v0  ;;  %v697_v15 = vpop.f32.mrb[2].mxu0 }
 0x2b8   : > { %v698_v16 = vadd.f32 %v697_v15, %v592_v14  ;;  %v699_v17 = vpop.f32.mrb[3].mxu0 }
 0x2b9   : > { %v700_v18 = vadd.f32 %v699_v17, %v592_v14 }
 0x2ba   : > { %722 = vst [vmem:[%s1051_s14 + $0x10] sm:$0xff] %v698_v16 }
 0x2bb   : > { %723 = vst [vmem:[%s1051_s14 + $0x18] sm:$0xff] %v700_v18  ;;  %v703_v20 = vpop.f32.mrb[4].mxu0 }
 0x2bc   : > { %v704_v21 = vadd.f32 %v703_v20, %v597_v19  ;;  %v705_v22 = vpop.f32.mrb[5].mxu0 }
 0x2bd   : > { %v706_v23 = vadd.f32 %v705_v22, %v597_v19 }
 0x2be   : > { %724 = vst [vmem:[%s1051_s14 + $0x20] sm:$0xff] %v704_v21 }
 0x2bf   : > { %725 = vst [vmem:[%s1051_s14 + $0x28] sm:$0xff] %v706_v23  ;;  %v709_v25 = vpop.f32.mrb[6].mxu0 }
 0x2c0   : > { %v710_v26 = vadd.f32 %v709_v25, %v602_v24  ;;  %v711_v27 = vpop.f32.mrb[7].mxu0 }
 0x2c1   : > { %v712_v28 = vadd.f32 %v711_v27, %v602_v24 }
 0x2c2   : > { %726 = vst [vmem:[%s1051_s14 + $0x30] sm:$0xff] %v710_v26 }
 0x2c3   : > { %727 = vst [vmem:[%s1051_s14 + $0x38] sm:$0xff] %v712_v28  ;;  %v715_v30 = vpop.f32.mrb[8].mxu0 }
 0x2c4   : > { %v716_v31 = vadd.f32 %v715_v30, %v607_v29  ;;  %v717_v32 = vpop.f32.mrb[9].mxu0 }
 0x2c5   : > { %v718_v33 = vadd.f32 %v717_v32, %v607_v29 }
 0x2c6   : > { %728 = vst [vmem:[%s1051_s14 + $0x40] sm:$0xf] %v716_v31 }
 0x2c7   : > { %729 = vst [vmem:[%s1051_s14 + $0x48] sm:$0xf] %v718_v33 }
 0x2c8 PF: > { %s17_s26 = sadd.s32 1, %s905_s26   ;;  %s1080_s24 = smov %s901_s25 }
 0x2c9   : > { %p14_p5 = scmp.ge.s32.totalorder %s17_s26, 4   ;;  %s1081_s25 = smov %s1083_s27 }
 0x2cb   :  { %16 = sbr.rel (!%p14_p5) target bundleno = 2 (0x2), region = 78 }

</bundles_post_ra>
